<compile_context>
chip_gen: v7x
topology: tpu7x:2x2x1
jax: 0.10.0
libtpu: 0.0.40
codegen_flags: <defaults>
</compile_context>

<pallas_src>
import math

import jax
import jax.numpy as jnp
from jax import lax
from jax.experimental import pallas as pl
from jax.experimental.pallas import tpu as pltpu

_K_TAPS = 8  # conv taps (3) padded up to 8 for a sublane-friendly matmul K dim


def _round_up(x, m):
    return (x + m - 1) // m * m


def _build_kernel(T, MB, C, H, L, NP):
    """Fused conv1d(k=3,pad=1)+ReLU -> L-layer LSTM -> Linear kernel (one row block)."""

    def kernel(*refs):
        taps_ref = refs[0]               # (T*MB, 8)  [x_prev | x | x_next | 0...], time-major
        cw_ref = refs[1]                 # (8, C)     conv taps (rows 3..7 are zero)
        cb_ref = refs[2]                 # (1, C)
        layer_refs = [(refs[3 + 3 * l], refs[4 + 3 * l], refs[5 + 3 * l])
                      for l in range(L)]  # (D,4H), (H,4H), (1,4H)
        fcw_ref = refs[3 + 3 * L]        # (H, NP)    lane-padded FC weight
        fcb_ref = refs[4 + 3 * L]        # (1, NP)
        n_in = 5 + 3 * L
        o_ref = refs[n_in]               # (MB, NP)
        gates_scr = refs[n_in + 1]       # (T*MB, 4H) hoisted input-projection gates
        hseq_scr = refs[n_in + 2] if L > 1 else None   # (T*MB, H) inner-layer hidden seq

        # ---- Conv1d(k=3, padding=1) + ReLU as a single MXU matmul ----
        conv = jnp.dot(taps_ref[...], cw_ref[...],
                       preferred_element_type=jnp.float32)     # (T*MB, C), lane-dense
        conv = jnp.maximum(conv + cb_ref[...], 0.0)
        layer_in = conv

        # ---- per-lane activation plumbing, hoisted out of all loops ----
        # Gate order (PyTorch): [i | f | g | o]; i/f/o use sigmoid, g uses tanh.
        # sigmoid(x) = 0.5*(1 + tanh(x/2))  -> one full-width tanh covers all four gates.
        lane = lax.broadcasted_iota(jnp.int32, (MB, 4 * H), 1)
        is_cand = (lane >= 2 * H) & (lane < 3 * H)
        pre_scale = jnp.where(is_cand, 1.0, 0.5).astype(jnp.float32)

        h_last = None
        for l in range(L):
            w_ih_ref, w_hh_ref, b_ref = layer_refs[l]
            # Hoisted input projection: ONE big MXU matmul over all T*MB rows.
            gates_scr[...] = (jnp.dot(layer_in, w_ih_ref[...],
                                      preferred_element_type=jnp.float32)
                              + b_ref[...])                    # (T*MB, 4H)
            w_hh = w_hh_ref[...]                               # (H, 4H), VMEM-resident
            is_last = (l == L - 1)

            def step(t, carry, w_hh=w_hh, is_last=is_last):
                h, c = carry
                row = pl.multiple_of(t * MB, MB)
                g = gates_scr[pl.ds(row, MB), :] + jnp.dot(
                    h, w_hh, preferred_element_type=jnp.float32)   # (MB, 4H)
                t_act = jnp.tanh(g * pre_scale)                    # one full-width EUP pass
                act = jnp.where(is_cand, t_act, 0.5 * (t_act + 1.0))
                i_g = act[:, 0:H]
                f_g = act[:, H:2 * H]
                c_g = act[:, 2 * H:3 * H]
                o_g = act[:, 3 * H:4 * H]
                c_new = f_g * c + i_g * c_g
                h_new = o_g * jnp.tanh(c_new)
                if not is_last:
                    # inner layers: keep the hidden sequence in VMEM for the next layer
                    hseq_scr[pl.ds(row, MB), :] = h_new
                return (h_new, c_new)

            init = (jnp.zeros((MB, H), jnp.float32),
                    jnp.zeros((MB, H), jnp.float32))
            h_last, _ = lax.fori_loop(0, T, step, init, unroll=min(T, 8))
            if not is_last:
                layer_in = hseq_scr[...]                       # (T*MB, H)

        # ---- final Linear on the last hidden state, lane-dense (MB, NP) store ----
        o_ref[...] = (jnp.dot(h_last, fcw_ref[...],
                              preferred_element_type=jnp.float32)
                      + fcb_ref[...])

    return kernel


# ----------------------------- full forward (single pallas_call) ----------------------
def cnn_lstm_forward(X, params):
    B, T, N = X.shape
    M = B * N
    C = params["conv_w"].shape[1]
    H = params["lstm"][0]["w_hh_t"].shape[0]
    L = len(params["lstm"])
    Nout = params["fc_w_t"].shape[1]

    # ---- layout decisions ----
    # Row blocks of independent (batch, node) sequences: multiple of 8, capped so the
    # per-block gates scratch (T*MB*4H f32) stays a few MiB (safe on v7x's 64 MiB VMEM).
    MB = min(_round_up(M, 8), 256)
    cap = max(8, ((8 * 1024 * 1024) // (T * 4 * H * 4)) // 8 * 8)
    MB = max(8, min(MB, cap))
    Mp = _round_up(M, MB)
    nb = Mp // MB
    NP = _round_up(Nout, 128)            # lane-dense output width

    # ---- input plumbing: all layout work done in the wrapper, kernel sees 2-D tiles ----
    # permute(0,2,1)+reshape(B*N, T) in PyTorch -> rows = sequences; pad rows to Mp.
    xm = jnp.transpose(X, (0, 2, 1)).reshape(M, T).astype(jnp.float32)   # (M, T)
    xm = jnp.pad(xm, ((0, Mp - M), (0, 0)))
    x_tm = xm.T                                                           # (T, Mp)
    zrow = jnp.zeros((1, Mp), jnp.float32)
    x_prev = jnp.concatenate([zrow, x_tm[:T - 1]], axis=0)
    x_next = jnp.concatenate([x_tm[1:], zrow], axis=0)
    taps = jnp.stack([x_prev, x_tm, x_next], axis=-1)                     # (T, Mp, 3)
    taps = jnp.pad(taps, ((0, 0), (0, 0), (0, _K_TAPS - 3)))              # (T, Mp, 8)
    # reorder so each row block is a contiguous time-major chunk: (nb, T*MB, 8)
    taps = taps.reshape(T, nb, MB, _K_TAPS).transpose(1, 0, 2, 3).reshape(nb, T * MB, _K_TAPS)

    conv_w = jnp.pad(params["conv_w"], ((0, _K_TAPS - 3), (0, 0)))        # (8, C)
    fc_w = jnp.pad(params["fc_w_t"], ((0, 0), (0, NP - Nout)))            # (H, NP)
    fc_b = jnp.pad(params["fc_b"], ((0, 0), (0, NP - Nout)))              # (1, NP)

    inputs = [taps, conv_w, params["conv_b"]]
    for layer in params["lstm"]:
        inputs += [layer["w_ih_t"], layer["w_hh_t"], layer["bias"]]
    inputs += [fc_w, fc_b]

    def const_spec(shape):
        nd = len(shape)
        return pl.BlockSpec(shape, lambda b, _nd=nd: (0,) * _nd)

    in_specs = [pl.BlockSpec((None, T * MB, _K_TAPS), lambda b: (b, 0, 0)),
                const_spec((_K_TAPS, C)),
                const_spec((1, C))]
    for layer in params["lstm"]:
        in_specs += [const_spec(tuple(layer["w_ih_t"].shape)),
                     const_spec(tuple(layer["w_hh_t"].shape)),
                     const_spec(tuple(layer["bias"].shape))]
    in_specs += [const_spec((H, NP)), const_spec((1, NP))]
    out_specs = pl.BlockSpec((None, MB, NP), lambda b: (b, 0, 0))

    scratch = [pltpu.VMEM((T * MB, 4 * H), jnp.float32)]
    if L > 1:
        scratch.append(pltpu.VMEM((T * MB, H), jnp.float32))
    # TODO(synk): for very large T with small M, time-chunk + double-buffer the gates
    # scratch instead of relying on the row-block cap alone.

    # VMEM budget with headroom (defaults are 16/32 MiB scoped on v5e/v6e, v7x phys 64).
    def f32_bytes(shape):
        return 4 * math.prod(shape)
    weight_bytes = (f32_bytes((_K_TAPS, C)) + f32_bytes((1, C))
                    + f32_bytes((H, NP)) + f32_bytes((1, NP)))
    for layer in params["lstm"]:
        weight_bytes += sum(f32_bytes(tuple(a.shape))
                            for a in (layer["w_ih_t"], layer["w_hh_t"], layer["bias"]))
    block_bytes = f32_bytes((T * MB, _K_TAPS)) + f32_bytes((MB, NP))
    scratch_bytes = f32_bytes((T * MB, 4 * H)) + (f32_bytes((T * MB, H)) if L > 1 else 0)
    est = 2 * (weight_bytes + block_bytes) + scratch_bytes
    vmem_limit = int(min(max(2 * est, 32 * 1024 * 1024), 64 * 1024 * 1024))

    out = pl.pallas_call(
        _build_kernel(T, MB, C, H, L, NP),
        out_shape=jax.ShapeDtypeStruct((nb, MB, NP), jnp.float32),
        grid=(nb,),
        in_specs=in_specs,
        out_specs=out_specs,
        scratch_shapes=scratch,
        compiler_params=pltpu.CompilerParams(
            dimension_semantics=("parallel",),
            vmem_limit_bytes=vmem_limit),
    )(*inputs)
    return out.reshape(Mp, NP)[:M, :Nout].reshape(B, N, Nout)


# ----------------------------- pure-JAX reference --------------------------------------
def reference_forward(X, params):
    B, T, N = X.shape
    x2 = jnp.transpose(X, (0, 2, 1)).reshape(B * N, T)
    z = jnp.zeros((B * N, 1), jnp.float32)
    xp = jnp.concatenate([z, x2[:, :-1]], 1)
    xn = jnp.concatenate([x2[:, 1:], z], 1)
    w = params["conv_w"]
    conv = (xp[:, :, None] * w[0] + x2[:, :, None] * w[1] + xn[:, :, None] * w[2]
            + params["conv_b"])
    conv = jnp.maximum(conv, 0.0)
    h_in = jnp.transpose(conv, (1, 0, 2))  # (T, M, C)
    for layer in params["lstm"]:
        M = h_in.shape[1]
        H = layer["w_hh_t"].shape[0]

        def step(carry, x_t, layer=layer, H=H):
            h, c = carry
            gates = x_t @ layer["w_ih_t"] + h @ layer["w_hh_t"] + layer["bias"]
            i = jax.nn.sigmoid(gates[:, :H])
            f = jax.nn.sigmoid(gates[:, H:2 * H])
            g = jnp.tanh(gates[:, 2 * H:3 * H])
            o = jax.nn.sigmoid(gates[:, 3 * H:])
            c = f * c + i * g
            h = o * jnp.tanh(c)
            return (h, c), h

        (_, _), hs = jax.lax.scan(step, (jnp.zeros((M, H)), jnp.zeros((M, H))), h_in)
        h_in = hs
    out = h_in[-1] @ params["fc_w_t"] + params["fc_b"]
    return out.reshape(B, N, -1)


# ----------------------------- parameter construction ----------------------------------
def make_params(key, cnn_channels, lstm_hidden_dim, lstm_layers, num_nodes):
    C, H = cnn_channels, lstm_hidden_dim
    keys = jax.random.split(key, 4 + 3 * lstm_layers)
    # Conv1d(1, C, k=3): PyTorch weight (C, 1, 3) stored here as (3, C); bias as (1, C).
    conv_w = 0.3 * jax.random.normal(keys[0], (3, C), jnp.float32)
    conv_b = 0.1 * jax.random.normal(keys[1], (1, C), jnp.float32)
    lstm = []
    D = C
    for l in range(lstm_layers):
        k_ih, k_hh, k_b = keys[2 + 3 * l], keys[3 + 3 * l], keys[4 + 3 * l]
        # PyTorch weight_ih (4H, D) / weight_hh (4H, H) stored pre-transposed.
        # NOTE: when loading real PyTorch weights, pass bias = b_ih + b_hh.
        w_ih_t = 0.2 * jax.random.normal(k_ih, (D, 4 * H), jnp.float32)
        w_hh_t = 0.2 * jax.random.normal(k_hh, (H, 4 * H), jnp.float32)
        bias = 0.1 * jax.random.normal(k_b, (1, 4 * H), jnp.float32)
        lstm.append({"w_ih_t": w_ih_t, "w_hh_t": w_hh_t, "bias": bias})
        D = H
    # Linear(H, num_nodes): PyTorch weight (num_nodes, H) stored transposed (H, num_nodes)
    fc_w_t = 0.2 * jax.random.normal(keys[-2], (H, num_nodes), jnp.float32)
    fc_b = 0.1 * jax.random.normal(keys[-1], (1, num_nodes), jnp.float32)
    return {"conv_w": conv_w, "conv_b": conv_b, "lstm": lstm,
            "fc_w_t": fc_w_t, "fc_b": fc_b}


if __name__ == "__main__":
    B, T, N = 2, 8, 4          # batch, seq_len, num_nodes
    C, H, L = 16, 32, 1        # cnn_channels, lstm_hidden_dim, lstm_layers (module defaults)

    key = jax.random.PRNGKey(0)
    kx, kp = jax.random.split(key)
    X = jax.random.normal(kx, (B, T, N), jnp.float32)
    params = make_params(kp, C, H, L, N)

    fwd = jax.jit(cnn_lstm_forward)
    out = jax.block_until_ready(fwd(X, params))
    ref = jax.block_until_ready(reference_forward(X, params))

    assert out.shape == (B, N, N), out.shape
    assert jnp.allclose(out, ref, atol=1e-3, rtol=1e-3), (
        f"max abs diff {jnp.max(jnp.abs(out - ref))}")

    print("KERNEL_OK")
</pallas_src>

<mosaic_0001>
module attributes {stable_mosaic.version = 11 : i64} {
  func.func @kernel(%arg0: i32, %arg1: memref<1x64x8xf32, #tpu.memory_space<vmem>>, %arg2: memref<8x16xf32, #tpu.memory_space<vmem>>, %arg3: memref<1x16xf32, #tpu.memory_space<vmem>>, %arg4: memref<16x128xf32, #tpu.memory_space<vmem>>, %arg5: memref<32x128xf32, #tpu.memory_space<vmem>>, %arg6: memref<1x128xf32, #tpu.memory_space<vmem>>, %arg7: memref<32x128xf32, #tpu.memory_space<vmem>>, %arg8: memref<1x128xf32, #tpu.memory_space<vmem>>, %arg9: memref<1x8x128xf32, #tpu.memory_space<vmem>>, %arg10: memref<64x128xf32, #tpu.memory_space<vmem>>) attributes {dimension_semantics = [#tpu.dimension_semantics<parallel>], iteration_bounds = array<i64: 1>, scalar_prefetch = 0 : i64, scratch_operands = 1 : i64, tpu.core_type = #tpu.core_type<tc>, window_params = [{transform_indices = @transform_0, window_bounds = array<i64: 1, 64, 8>}, {pipeline_mode = #tpu.pipeline_mode<synchronous>, transform_indices = @transform_1, window_bounds = array<i64: 8, 16>}, {pipeline_mode = #tpu.pipeline_mode<synchronous>, transform_indices = @transform_2, window_bounds = array<i64: 1, 16>}, {pipeline_mode = #tpu.pipeline_mode<synchronous>, transform_indices = @transform_3, window_bounds = array<i64: 16, 128>}, {pipeline_mode = #tpu.pipeline_mode<synchronous>, transform_indices = @transform_4, window_bounds = array<i64: 32, 128>}, {pipeline_mode = #tpu.pipeline_mode<synchronous>, transform_indices = @transform_5, window_bounds = array<i64: 1, 128>}, {pipeline_mode = #tpu.pipeline_mode<synchronous>, transform_indices = @transform_6, window_bounds = array<i64: 32, 128>}, {pipeline_mode = #tpu.pipeline_mode<synchronous>, transform_indices = @transform_7, window_bounds = array<i64: 1, 128>}, {transform_indices = @transform_8, window_bounds = array<i64: 1, 8, 128>}]} {
    %c0 = arith.constant 0 : index
    %c0_0 = arith.constant 0 : index
    %c0_1 = arith.constant 0 : index
    %0 = vector.load %arg1[%c0, %c0_0, %c0_1] : memref<1x64x8xf32, #tpu.memory_space<vmem>>, vector<1x64x8xf32>
    %1 = vector.shape_cast %0 : vector<1x64x8xf32> to vector<64x8xf32>
    %c0_2 = arith.constant 0 : index
    %c0_3 = arith.constant 0 : index
    %2 = vector.load %arg2[%c0_2, %c0_3] : memref<8x16xf32, #tpu.memory_space<vmem>>, vector<8x16xf32>
    %cst = arith.constant dense<0.000000e+00> : vector<64x16xf32>
    %3 = tpu.matmul %1, %2, %cst {dimension_numbers = #tpu.dot_dimension_numbers<[1], [0], [0], [1], [0, 0, 1, 1], [], []>} : vector<64x8xf32>, vector<8x16xf32>, vector<64x16xf32> -> vector<64x16xf32>
    %c0_4 = arith.constant 0 : index
    %c0_5 = arith.constant 0 : index
    %4 = vector.load %arg3[%c0_4, %c0_5] : memref<1x16xf32, #tpu.memory_space<vmem>>, vector<1x16xf32>
    %5 = vector.broadcast %4 : vector<1x16xf32> to vector<64x16xf32>
    %6 = arith.addf %3, %5 : vector<64x16xf32>
    %cst_6 = arith.constant 0.000000e+00 : f32
    %7 = vector.broadcast %cst_6 : f32 to vector<64x16xf32>
    %8 = arith.maximumf %6, %7 : vector<64x16xf32>
    %9 = tpu.iota {dimensions = array<i32: 1>} : vector<8x128xi32>
    %c64_i32 = arith.constant 64 : i32
    %10 = vector.broadcast %c64_i32 : i32 to vector<8x128xi32>
    %11 = arith.cmpi sge, %9, %10 : vector<8x128xi32>
    %c96_i32 = arith.constant 96 : i32
    %12 = vector.broadcast %c96_i32 : i32 to vector<8x128xi32>
    %13 = arith.cmpi slt, %9, %12 : vector<8x128xi32>
    %14 = arith.andi %11, %13 : vector<8x128xi1>
    %cst_7 = arith.constant 1.000000e+00 : f32
    %cst_8 = arith.constant 5.000000e-01 : f32
    %15 = vector.broadcast %cst_7 : f32 to vector<8x128xf32>
    %16 = vector.broadcast %cst_8 : f32 to vector<8x128xf32>
    %17 = arith.select %14, %15, %16 : vector<8x128xi1>, vector<8x128xf32>
    %c0_9 = arith.constant 0 : index
    %c0_10 = arith.constant 0 : index
    %18 = vector.load %arg4[%c0_9, %c0_10] : memref<16x128xf32, #tpu.memory_space<vmem>>, vector<16x128xf32>
    %cst_11 = arith.constant dense<0.000000e+00> : vector<64x128xf32>
    %19 = tpu.matmul %8, %18, %cst_11 {dimension_numbers = #tpu.dot_dimension_numbers<[1], [0], [0], [1], [0, 0, 1, 1], [], []>} : vector<64x16xf32>, vector<16x128xf32>, vector<64x128xf32> -> vector<64x128xf32>
    %c0_12 = arith.constant 0 : index
    %c0_13 = arith.constant 0 : index
    %20 = vector.load %arg6[%c0_12, %c0_13] : memref<1x128xf32, #tpu.memory_space<vmem>>, vector<1x128xf32>
    %21 = vector.broadcast %20 : vector<1x128xf32> to vector<64x128xf32>
    %22 = arith.addf %19, %21 : vector<64x128xf32>
    %c0_14 = arith.constant 0 : index
    %c0_15 = arith.constant 0 : index
    %23 = vector.load %arg10[%c0_14, %c0_15] : memref<64x128xf32, #tpu.memory_space<vmem>>, vector<64x128xf32>
    tpu.vector_store %arg10[%c0_14, %c0_15], %22 {strides = array<i32>} : memref<64x128xf32, #tpu.memory_space<vmem>>, vector<64x128xf32>,
    %c0_16 = arith.constant 0 : index
    %c0_17 = arith.constant 0 : index
    %24 = vector.load %arg5[%c0_16, %c0_17] : memref<32x128xf32, #tpu.memory_space<vmem>>, vector<32x128xf32>
    %cst_18 = arith.constant 0.000000e+00 : f32
    %25 = vector.broadcast %cst_18 : f32 to vector<8x32xf32>
    %cst_19 = arith.constant 0.000000e+00 : f32
    %26 = vector.broadcast %cst_19 : f32 to vector<8x32xf32>
    %c0_i32 = arith.constant 0 : i32
    %c8_i32 = arith.constant 8 : i32
    %27 = arith.muli %c0_i32, %c8_i32 : i32
    %28 = tpu.assume_multiple %27, 8 : i32
    %29 = arith.index_cast %28 : i32 to index
    %c0_20 = arith.constant 0 : index
    %30 = vector.load %arg10[%29, %c0_20] : memref<64x128xf32, #tpu.memory_space<vmem>>, vector<8x128xf32>
    %cst_21 = arith.constant dense<0.000000e+00> : vector<8x128xf32>
    %31 = tpu.matmul %25, %24, %cst_21 {dimension_numbers = #tpu.dot_dimension_numbers<[1], [0], [0], [1], [0, 0, 1, 1], [], []>} : vector<8x32xf32>, vector<32x128xf32>, vector<8x128xf32> -> vector<8x128xf32>
    %32 = arith.addf %30, %31 : vector<8x128xf32>
    %33 = arith.mulf %32, %17 : vector<8x128xf32>
    %34 = math.tanh %33 : vector<8x128xf32>
    %cst_22 = arith.constant 1.000000e+00 : f32
    %35 = vector.broadcast %cst_22 : f32 to vector<8x128xf32>
    %36 = arith.addf %34, %35 : vector<8x128xf32>
    %cst_23 = arith.constant 5.000000e-01 : f32
    %37 = vector.broadcast %cst_23 : f32 to vector<8x128xf32>
    %38 = arith.mulf %37, %36 : vector<8x128xf32>
    %39 = arith.select %14, %34, %38 : vector<8x128xi1>, vector<8x128xf32>
    %40 = vector.extract_strided_slice %39 {offsets = [0, 0], sizes = [8, 32], strides = [1, 1]} : vector<8x128xf32> to vector<8x32xf32>
    %41 = vector.extract_strided_slice %39 {offsets = [0, 32], sizes = [8, 32], strides = [1, 1]} : vector<8x128xf32> to vector<8x32xf32>
    %42 = vector.extract_strided_slice %39 {offsets = [0, 64], sizes = [8, 32], strides = [1, 1]} : vector<8x128xf32> to vector<8x32xf32>
    %43 = vector.extract_strided_slice %39 {offsets = [0, 96], sizes = [8, 32], strides = [1, 1]} : vector<8x128xf32> to vector<8x32xf32>
    %44 = arith.mulf %41, %26 : vector<8x32xf32>
    %45 = arith.mulf %40, %42 : vector<8x32xf32>
    %46 = arith.addf %44, %45 : vector<8x32xf32>
    %47 = math.tanh %46 : vector<8x32xf32>
    %48 = arith.mulf %43, %47 : vector<8x32xf32>
    %c1_i32 = arith.constant 1 : i32
    %c8_i32_24 = arith.constant 8 : i32
    %49 = arith.muli %c1_i32, %c8_i32_24 : i32
    %50 = tpu.assume_multiple %49, 8 : i32
    %51 = arith.index_cast %50 : i32 to index
    %c0_25 = arith.constant 0 : index
    %52 = vector.load %arg10[%51, %c0_25] : memref<64x128xf32, #tpu.memory_space<vmem>>, vector<8x128xf32>
    %cst_26 = arith.constant dense<0.000000e+00> : vector<8x128xf32>
    %53 = tpu.matmul %48, %24, %cst_26 {dimension_numbers = #tpu.dot_dimension_numbers<[1], [0], [0], [1], [0, 0, 1, 1], [], []>} : vector<8x32xf32>, vector<32x128xf32>, vector<8x128xf32> -> vector<8x128xf32>
    %54 = arith.addf %52, %53 : vector<8x128xf32>
    %55 = arith.mulf %54, %17 : vector<8x128xf32>
    %56 = math.tanh %55 : vector<8x128xf32>
    %cst_27 = arith.constant 1.000000e+00 : f32
    %57 = vector.broadcast %cst_27 : f32 to vector<8x128xf32>
    %58 = arith.addf %56, %57 : vector<8x128xf32>
    %cst_28 = arith.constant 5.000000e-01 : f32
    %59 = vector.broadcast %cst_28 : f32 to vector<8x128xf32>
    %60 = arith.mulf %59, %58 : vector<8x128xf32>
    %61 = arith.select %14, %56, %60 : vector<8x128xi1>, vector<8x128xf32>
    %62 = vector.extract_strided_slice %61 {offsets = [0, 0], sizes = [8, 32], strides = [1, 1]} : vector<8x128xf32> to vector<8x32xf32>
    %63 = vector.extract_strided_slice %61 {offsets = [0, 32], sizes = [8, 32], strides = [1, 1]} : vector<8x128xf32> to vector<8x32xf32>
    %64 = vector.extract_strided_slice %61 {offsets = [0, 64], sizes = [8, 32], strides = [1, 1]} : vector<8x128xf32> to vector<8x32xf32>
    %65 = vector.extract_strided_slice %61 {offsets = [0, 96], sizes = [8, 32], strides = [1, 1]} : vector<8x128xf32> to vector<8x32xf32>
    %66 = arith.mulf %63, %46 : vector<8x32xf32>
    %67 = arith.mulf %62, %64 : vector<8x32xf32>
    %68 = arith.addf %66, %67 : vector<8x32xf32>
    %69 = math.tanh %68 : vector<8x32xf32>
    %70 = arith.mulf %65, %69 : vector<8x32xf32>
    %c2_i32 = arith.constant 2 : i32
    %c8_i32_29 = arith.constant 8 : i32
    %71 = arith.muli %c2_i32, %c8_i32_29 : i32
    %72 = tpu.assume_multiple %71, 8 : i32
    %73 = arith.index_cast %72 : i32 to index
    %c0_30 = arith.constant 0 : index
    %74 = vector.load %arg10[%73, %c0_30] : memref<64x128xf32, #tpu.memory_space<vmem>>, vector<8x128xf32>
    %cst_31 = arith.constant dense<0.000000e+00> : vector<8x128xf32>
    %75 = tpu.matmul %70, %24, %cst_31 {dimension_numbers = #tpu.dot_dimension_numbers<[1], [0], [0], [1], [0, 0, 1, 1], [], []>} : vector<8x32xf32>, vector<32x128xf32>, vector<8x128xf32> -> vector<8x128xf32>
    %76 = arith.addf %74, %75 : vector<8x128xf32>
    %77 = arith.mulf %76, %17 : vector<8x128xf32>
    %78 = math.tanh %77 : vector<8x128xf32>
    %cst_32 = arith.constant 1.000000e+00 : f32
    %79 = vector.broadcast %cst_32 : f32 to vector<8x128xf32>
    %80 = arith.addf %78, %79 : vector<8x128xf32>
    %cst_33 = arith.constant 5.000000e-01 : f32
    %81 = vector.broadcast %cst_33 : f32 to vector<8x128xf32>
    %82 = arith.mulf %81, %80 : vector<8x128xf32>
    %83 = arith.select %14, %78, %82 : vector<8x128xi1>, vector<8x128xf32>
    %84 = vector.extract_strided_slice %83 {offsets = [0, 0], sizes = [8, 32], strides = [1, 1]} : vector<8x128xf32> to vector<8x32xf32>
    %85 = vector.extract_strided_slice %83 {offsets = [0, 32], sizes = [8, 32], strides = [1, 1]} : vector<8x128xf32> to vector<8x32xf32>
    %86 = vector.extract_strided_slice %83 {offsets = [0, 64], sizes = [8, 32], strides = [1, 1]} : vector<8x128xf32> to vector<8x32xf32>
    %87 = vector.extract_strided_slice %83 {offsets = [0, 96], sizes = [8, 32], strides = [1, 1]} : vector<8x128xf32> to vector<8x32xf32>
    %88 = arith.mulf %85, %68 : vector<8x32xf32>
    %89 = arith.mulf %84, %86 : vector<8x32xf32>
    %90 = arith.addf %88, %89 : vector<8x32xf32>
    %91 = math.tanh %90 : vector<8x32xf32>
    %92 = arith.mulf %87, %91 : vector<8x32xf32>
    %c3_i32 = arith.constant 3 : i32
    %c8_i32_34 = arith.constant 8 : i32
    %93 = arith.muli %c3_i32, %c8_i32_34 : i32
    %94 = tpu.assume_multiple %93, 8 : i32
    %95 = arith.index_cast %94 : i32 to index
    %c0_35 = arith.constant 0 : index
    %96 = vector.load %arg10[%95, %c0_35] : memref<64x128xf32, #tpu.memory_space<vmem>>, vector<8x128xf32>
    %cst_36 = arith.constant dense<0.000000e+00> : vector<8x128xf32>
    %97 = tpu.matmul %92, %24, %cst_36 {dimension_numbers = #tpu.dot_dimension_numbers<[1], [0], [0], [1], [0, 0, 1, 1], [], []>} : vector<8x32xf32>, vector<32x128xf32>, vector<8x128xf32> -> vector<8x128xf32>
    %98 = arith.addf %96, %97 : vector<8x128xf32>
    %99 = arith.mulf %98, %17 : vector<8x128xf32>
    %100 = math.tanh %99 : vector<8x128xf32>
    %cst_37 = arith.constant 1.000000e+00 : f32
    %101 = vector.broadcast %cst_37 : f32 to vector<8x128xf32>
    %102 = arith.addf %100, %101 : vector<8x128xf32>
    %cst_38 = arith.constant 5.000000e-01 : f32
    %103 = vector.broadcast %cst_38 : f32 to vector<8x128xf32>
    %104 = arith.mulf %103, %102 : vector<8x128xf32>
    %105 = arith.select %14, %100, %104 : vector<8x128xi1>, vector<8x128xf32>
    %106 = vector.extract_strided_slice %105 {offsets = [0, 0], sizes = [8, 32], strides = [1, 1]} : vector<8x128xf32> to vector<8x32xf32>
    %107 = vector.extract_strided_slice %105 {offsets = [0, 32], sizes = [8, 32], strides = [1, 1]} : vector<8x128xf32> to vector<8x32xf32>
    %108 = vector.extract_strided_slice %105 {offsets = [0, 64], sizes = [8, 32], strides = [1, 1]} : vector<8x128xf32> to vector<8x32xf32>
    %109 = vector.extract_strided_slice %105 {offsets = [0, 96], sizes = [8, 32], strides = [1, 1]} : vector<8x128xf32> to vector<8x32xf32>
    %110 = arith.mulf %107, %90 : vector<8x32xf32>
    %111 = arith.mulf %106, %108 : vector<8x32xf32>
    %112 = arith.addf %110, %111 : vector<8x32xf32>
    %113 = math.tanh %112 : vector<8x32xf32>
    %114 = arith.mulf %109, %113 : vector<8x32xf32>
    %c4_i32 = arith.constant 4 : i32
    %c8_i32_39 = arith.constant 8 : i32
    %115 = arith.muli %c4_i32, %c8_i32_39 : i32
    %116 = tpu.assume_multiple %115, 8 : i32
    %117 = arith.index_cast %116 : i32 to index
    %c0_40 = arith.constant 0 : index
    %118 = vector.load %arg10[%117, %c0_40] : memref<64x128xf32, #tpu.memory_space<vmem>>, vector<8x128xf32>
    %cst_41 = arith.constant dense<0.000000e+00> : vector<8x128xf32>
    %119 = tpu.matmul %114, %24, %cst_41 {dimension_numbers = #tpu.dot_dimension_numbers<[1], [0], [0], [1], [0, 0, 1, 1], [], []>} : vector<8x32xf32>, vector<32x128xf32>, vector<8x128xf32> -> vector<8x128xf32>
    %120 = arith.addf %118, %119 : vector<8x128xf32>
    %121 = arith.mulf %120, %17 : vector<8x128xf32>
    %122 = math.tanh %121 : vector<8x128xf32>
    %cst_42 = arith.constant 1.000000e+00 : f32
    %123 = vector.broadcast %cst_42 : f32 to vector<8x128xf32>
    %124 = arith.addf %122, %123 : vector<8x128xf32>
    %cst_43 = arith.constant 5.000000e-01 : f32
    %125 = vector.broadcast %cst_43 : f32 to vector<8x128xf32>
    %126 = arith.mulf %125, %124 : vector<8x128xf32>
    %127 = arith.select %14, %122, %126 : vector<8x128xi1>, vector<8x128xf32>
    %128 = vector.extract_strided_slice %127 {offsets = [0, 0], sizes = [8, 32], strides = [1, 1]} : vector<8x128xf32> to vector<8x32xf32>
    %129 = vector.extract_strided_slice %127 {offsets = [0, 32], sizes = [8, 32], strides = [1, 1]} : vector<8x128xf32> to vector<8x32xf32>
    %130 = vector.extract_strided_slice %127 {offsets = [0, 64], sizes = [8, 32], strides = [1, 1]} : vector<8x128xf32> to vector<8x32xf32>
    %131 = vector.extract_strided_slice %127 {offsets = [0, 96], sizes = [8, 32], strides = [1, 1]} : vector<8x128xf32> to vector<8x32xf32>
    %132 = arith.mulf %129, %112 : vector<8x32xf32>
    %133 = arith.mulf %128, %130 : vector<8x32xf32>
    %134 = arith.addf %132, %133 : vector<8x32xf32>
    %135 = math.tanh %134 : vector<8x32xf32>
    %136 = arith.mulf %131, %135 : vector<8x32xf32>
    %c5_i32 = arith.constant 5 : i32
    %c8_i32_44 = arith.constant 8 : i32
    %137 = arith.muli %c5_i32, %c8_i32_44 : i32
    %138 = tpu.assume_multiple %137, 8 : i32
    %139 = arith.index_cast %138 : i32 to index
    %c0_45 = arith.constant 0 : index
    %140 = vector.load %arg10[%139, %c0_45] : memref<64x128xf32, #tpu.memory_space<vmem>>, vector<8x128xf32>
    %cst_46 = arith.constant dense<0.000000e+00> : vector<8x128xf32>
    %141 = tpu.matmul %136, %24, %cst_46 {dimension_numbers = #tpu.dot_dimension_numbers<[1], [0], [0], [1], [0, 0, 1, 1], [], []>} : vector<8x32xf32>, vector<32x128xf32>, vector<8x128xf32> -> vector<8x128xf32>
    %142 = arith.addf %140, %141 : vector<8x128xf32>
    %143 = arith.mulf %142, %17 : vector<8x128xf32>
    %144 = math.tanh %143 : vector<8x128xf32>
    %cst_47 = arith.constant 1.000000e+00 : f32
    %145 = vector.broadcast %cst_47 : f32 to vector<8x128xf32>
    %146 = arith.addf %144, %145 : vector<8x128xf32>
    %cst_48 = arith.constant 5.000000e-01 : f32
    %147 = vector.broadcast %cst_48 : f32 to vector<8x128xf32>
    %148 = arith.mulf %147, %146 : vector<8x128xf32>
    %149 = arith.select %14, %144, %148 : vector<8x128xi1>, vector<8x128xf32>
    %150 = vector.extract_strided_slice %149 {offsets = [0, 0], sizes = [8, 32], strides = [1, 1]} : vector<8x128xf32> to vector<8x32xf32>
    %151 = vector.extract_strided_slice %149 {offsets = [0, 32], sizes = [8, 32], strides = [1, 1]} : vector<8x128xf32> to vector<8x32xf32>
    %152 = vector.extract_strided_slice %149 {offsets = [0, 64], sizes = [8, 32], strides = [1, 1]} : vector<8x128xf32> to vector<8x32xf32>
    %153 = vector.extract_strided_slice %149 {offsets = [0, 96], sizes = [8, 32], strides = [1, 1]} : vector<8x128xf32> to vector<8x32xf32>
    %154 = arith.mulf %151, %134 : vector<8x32xf32>
    %155 = arith.mulf %150, %152 : vector<8x32xf32>
    %156 = arith.addf %154, %155 : vector<8x32xf32>
    %157 = math.tanh %156 : vector<8x32xf32>
    %158 = arith.mulf %153, %157 : vector<8x32xf32>
    %c6_i32 = arith.constant 6 : i32
    %c8_i32_49 = arith.constant 8 : i32
    %159 = arith.muli %c6_i32, %c8_i32_49 : i32
    %160 = tpu.assume_multiple %159, 8 : i32
    %161 = arith.index_cast %160 : i32 to index
    %c0_50 = arith.constant 0 : index
    %162 = vector.load %arg10[%161, %c0_50] : memref<64x128xf32, #tpu.memory_space<vmem>>, vector<8x128xf32>
    %cst_51 = arith.constant dense<0.000000e+00> : vector<8x128xf32>
    %163 = tpu.matmul %158, %24, %cst_51 {dimension_numbers = #tpu.dot_dimension_numbers<[1], [0], [0], [1], [0, 0, 1, 1], [], []>} : vector<8x32xf32>, vector<32x128xf32>, vector<8x128xf32> -> vector<8x128xf32>
    %164 = arith.addf %162, %163 : vector<8x128xf32>
    %165 = arith.mulf %164, %17 : vector<8x128xf32>
    %166 = math.tanh %165 : vector<8x128xf32>
    %cst_52 = arith.constant 1.000000e+00 : f32
    %167 = vector.broadcast %cst_52 : f32 to vector<8x128xf32>
    %168 = arith.addf %166, %167 : vector<8x128xf32>
    %cst_53 = arith.constant 5.000000e-01 : f32
    %169 = vector.broadcast %cst_53 : f32 to vector<8x128xf32>
    %170 = arith.mulf %169, %168 : vector<8x128xf32>
    %171 = arith.select %14, %166, %170 : vector<8x128xi1>, vector<8x128xf32>
    %172 = vector.extract_strided_slice %171 {offsets = [0, 0], sizes = [8, 32], strides = [1, 1]} : vector<8x128xf32> to vector<8x32xf32>
    %173 = vector.extract_strided_slice %171 {offsets = [0, 32], sizes = [8, 32], strides = [1, 1]} : vector<8x128xf32> to vector<8x32xf32>
    %174 = vector.extract_strided_slice %171 {offsets = [0, 64], sizes = [8, 32], strides = [1, 1]} : vector<8x128xf32> to vector<8x32xf32>
    %175 = vector.extract_strided_slice %171 {offsets = [0, 96], sizes = [8, 32], strides = [1, 1]} : vector<8x128xf32> to vector<8x32xf32>
    %176 = arith.mulf %173, %156 : vector<8x32xf32>
    %177 = arith.mulf %172, %174 : vector<8x32xf32>
    %178 = arith.addf %176, %177 : vector<8x32xf32>
    %179 = math.tanh %178 : vector<8x32xf32>
    %180 = arith.mulf %175, %179 : vector<8x32xf32>
    %c7_i32 = arith.constant 7 : i32
    %c8_i32_54 = arith.constant 8 : i32
    %181 = arith.muli %c7_i32, %c8_i32_54 : i32
    %182 = tpu.assume_multiple %181, 8 : i32
    %183 = arith.index_cast %182 : i32 to index
    %c0_55 = arith.constant 0 : index
    %184 = vector.load %arg10[%183, %c0_55] : memref<64x128xf32, #tpu.memory_space<vmem>>, vector<8x128xf32>
    %cst_56 = arith.constant dense<0.000000e+00> : vector<8x128xf32>
    %185 = tpu.matmul %180, %24, %cst_56 {dimension_numbers = #tpu.dot_dimension_numbers<[1], [0], [0], [1], [0, 0, 1, 1], [], []>} : vector<8x32xf32>, vector<32x128xf32>, vector<8x128xf32> -> vector<8x128xf32>
    %186 = arith.addf %184, %185 : vector<8x128xf32>
    %187 = arith.mulf %186, %17 : vector<8x128xf32>
    %188 = math.tanh %187 : vector<8x128xf32>
    %cst_57 = arith.constant 1.000000e+00 : f32
    %189 = vector.broadcast %cst_57 : f32 to vector<8x128xf32>
    %190 = arith.addf %188, %189 : vector<8x128xf32>
    %cst_58 = arith.constant 5.000000e-01 : f32
    %191 = vector.broadcast %cst_58 : f32 to vector<8x128xf32>
    %192 = arith.mulf %191, %190 : vector<8x128xf32>
    %193 = arith.select %14, %188, %192 : vector<8x128xi1>, vector<8x128xf32>
    %194 = vector.extract_strided_slice %193 {offsets = [0, 0], sizes = [8, 32], strides = [1, 1]} : vector<8x128xf32> to vector<8x32xf32>
    %195 = vector.extract_strided_slice %193 {offsets = [0, 32], sizes = [8, 32], strides = [1, 1]} : vector<8x128xf32> to vector<8x32xf32>
    %196 = vector.extract_strided_slice %193 {offsets = [0, 64], sizes = [8, 32], strides = [1, 1]} : vector<8x128xf32> to vector<8x32xf32>
    %197 = vector.extract_strided_slice %193 {offsets = [0, 96], sizes = [8, 32], strides = [1, 1]} : vector<8x128xf32> to vector<8x32xf32>
    %198 = arith.mulf %195, %178 : vector<8x32xf32>
    %199 = arith.mulf %194, %196 : vector<8x32xf32>
    %200 = arith.addf %198, %199 : vector<8x32xf32>
    %201 = math.tanh %200 : vector<8x32xf32>
    %202 = arith.mulf %197, %201 : vector<8x32xf32>
    %c8_i32_59 = arith.constant 8 : i32
    %c0_60 = arith.constant 0 : index
    %c0_61 = arith.constant 0 : index
    %203 = vector.load %arg7[%c0_60, %c0_61] : memref<32x128xf32, #tpu.memory_space<vmem>>, vector<32x128xf32>
    %cst_62 = arith.constant dense<0.000000e+00> : vector<8x128xf32>
    %204 = tpu.matmul %202, %203, %cst_62 {dimension_numbers = #tpu.dot_dimension_numbers<[1], [0], [0], [1], [0, 0, 1, 1], [], []>} : vector<8x32xf32>, vector<32x128xf32>, vector<8x128xf32> -> vector<8x128xf32>
    %c0_63 = arith.constant 0 : index
    %c0_64 = arith.constant 0 : index
    %205 = vector.load %arg8[%c0_63, %c0_64] : memref<1x128xf32, #tpu.memory_space<vmem>>, vector<1x128xf32>
    %206 = vector.broadcast %205 : vector<1x128xf32> to vector<8x128xf32>
    %207 = arith.addf %204, %206 : vector<8x128xf32>
    %c0_65 = arith.constant 0 : index
    %c0_66 = arith.constant 0 : index
    %c0_67 = arith.constant 0 : index
    %208 = vector.load %arg9[%c0_65, %c0_66, %c0_67] : memref<1x8x128xf32, #tpu.memory_space<vmem>>, vector<1x8x128xf32>
    %209 = vector.shape_cast %208 : vector<1x8x128xf32> to vector<8x128xf32>
    %210 = vector.shape_cast %207 : vector<8x128xf32> to vector<1x8x128xf32>
    tpu.vector_store %arg9[%c0_65, %c0_66, %c0_67], %210 {strides = array<i32>} : memref<1x8x128xf32, #tpu.memory_space<vmem>>, vector<1x8x128xf32>,
    return
  }
  func.func @transform_0(%arg0: i32) -> (i32, i32, i32) {
    %c0_i32 = arith.constant 0 : i32
    %c0_i32_0 = arith.constant 0 : i32
    %c0_i32_1 = arith.constant 0 : i32
    return %arg0, %c0_i32, %c0_i32_0 : i32, i32, i32
  }
  func.func @transform_1(%arg0: i32) -> (i32, i32) {
    %c0_i32 = arith.constant 0 : i32
    %c0_i32_0 = arith.constant 0 : i32
    %c0_i32_1 = arith.constant 0 : i32
    return %c0_i32, %c0_i32_0 : i32, i32
  }
  func.func @transform_2(%arg0: i32) -> (i32, i32) {
    %c0_i32 = arith.constant 0 : i32
    %c0_i32_0 = arith.constant 0 : i32
    %c0_i32_1 = arith.constant 0 : i32
    return %c0_i32, %c0_i32_0 : i32, i32
  }
  func.func @transform_3(%arg0: i32) -> (i32, i32) {
    %c0_i32 = arith.constant 0 : i32
    %c0_i32_0 = arith.constant 0 : i32
    %c0_i32_1 = arith.constant 0 : i32
    return %c0_i32, %c0_i32_0 : i32, i32
  }
  func.func @transform_4(%arg0: i32) -> (i32, i32) {
    %c0_i32 = arith.constant 0 : i32
    %c0_i32_0 = arith.constant 0 : i32
    %c0_i32_1 = arith.constant 0 : i32
    return %c0_i32, %c0_i32_0 : i32, i32
  }
  func.func @transform_5(%arg0: i32) -> (i32, i32) {
    %c0_i32 = arith.constant 0 : i32
    %c0_i32_0 = arith.constant 0 : i32
    %c0_i32_1 = arith.constant 0 : i32
    return %c0_i32, %c0_i32_0 : i32, i32
  }
  func.func @transform_6(%arg0: i32) -> (i32, i32) {
    %c0_i32 = arith.constant 0 : i32
    %c0_i32_0 = arith.constant 0 : i32
    %c0_i32_1 = arith.constant 0 : i32
    return %c0_i32, %c0_i32_0 : i32, i32
  }
  func.func @transform_7(%arg0: i32) -> (i32, i32) {
    %c0_i32 = arith.constant 0 : i32
    %c0_i32_0 = arith.constant 0 : i32
    %c0_i32_1 = arith.constant 0 : i32
    return %c0_i32, %c0_i32_0 : i32, i32
  }
  func.func @transform_8(%arg0: i32) -> (i32, i32, i32) {
    %c0_i32 = arith.constant 0 : i32
    %c0_i32_0 = arith.constant 0 : i32
    %c0_i32_1 = arith.constant 0 : i32
    return %arg0, %c0_i32, %c0_i32_0 : i32, i32, i32
  }
}

</mosaic_0001>

<bundles_post_ra>
// kernel: cnn_lstm_forward.1
= control target key start
LH: loop header
LB: loop body
LE: loop exit
PB: predicated region body
PF: predicated region fallthrough
CT: control target
= control target key end

     0   :  { %vm46_vm0 = vcmask 64512   ;;  %v1583_v6 = vmov 0.0|0.0   ;;  %s1883_s0 = inlined_call_operand.vmem [shape: f32[1,64,8], index: 0, kind: input, shape index: {}]   ;;  %s1884_s1 = inlined_call_operand.vmem [shape: f32[8,16], index: 1, kind: input, shape index: {}]   ;;  %s1885_s2 = inlined_call_operand.vmem [shape: f32[1,16], index: 2, kind: input, shape index: {}]   ;;  %s1886_s3 = inlined_call_operand.vmem [shape: f32[16,128], index: 3, kind: input, shape index: {}]   ;;  %s1887_s4 = inlined_call_operand.vmem [shape: f32[32,128], index: 4, kind: input, shape index: {}]   ;;  %s1888_s5 = inlined_call_operand.vmem [shape: f32[1,128], index: 5, kind: input, shape index: {}]   ;;  %s1889_s6 = inlined_call_operand.vmem [shape: f32[32,128], index: 6, kind: input, shape index: {}]   ;;  %s1890_s7 = inlined_call_operand.vmem [shape: f32[1,128], index: 7, kind: input, shape index: {}]   ;;  %s1891_s8 = inlined_call_operand.hbm [shape: f32[1,8,128], index: 8, kind: output, shape index: {}]  }
   0x1   :  { %v38_v0 = vld [vmem:[%s1884_s1] sm:$0xff]  ;;  %v31_v2 = vld [vmem:[%s1883_s0 + $0x8] sm:$0xff]  ;;  %v32_v3 = vld [vmem:[%s1883_s0 + $0x10] sm:$0xff] }
   0x2   :  { %v30_v1 = vld [vmem:[%s1883_s0] sm:$0xff]  ;;  %1331 = vmatprep.subr.mxu0 %v38_v0  ;;  %1518 = vmatprep.subr.mxu1 %v38_v0  ;;  %v338_v5 = vld [vmem:[%s1887_s4 + $0x8] sm:$0xff]  ;;  %v36_v8 = vld [vmem:[%s1883_s0 + $0x30] sm:$0xff] }
   0x3   :  { %1333 = vmatprep.mubr.msk.f32.mxu0 %vm46_vm0, %v30_v1  ;;  %1332 = vmatpush3.msra.mxu0 %v38_v0  ;;  %v337_v4 = vld [vmem:[%s1887_s4] sm:$0xff] }
   0x4   :  { %1334 = vmatmul.mubr.msk.f32.vlgmr.msra.gmra.mrb[0].mxu0 %vm46_vm0, %v31_v2  ;;  %1464 = vmatprep.subr.bf16.mxu0 %v1583_v6  ;;  %v1656_v7 = vpack.c.bf16 %v338_v5, %v337_v4 }
   0x5   :  { %13 = vsyncpa [#allocation4], 0  ;;  %1336 = vmatprep.mubr.msk.f32.mxu0 %vm46_vm0, %v32_v3  ;;  %v33_v9 = vld [vmem:[%s1883_s0 + $0x18] sm:$0xff]  ;;  %1519 = vmatpush3.msra.mxu1 %v38_v0  ;;  %v34_v10 = vld [vmem:[%s1883_s0 + $0x20] sm:$0xff]  ;;  %vm1584_vm1 = vmmov 0   ;;  %v1585_v19 = vmov 0.0   ;;  %v184_v47 = vlaneseq }
   0x6   :  { %1466 = vmatpush3.bf16.msra.mxu0 %v1656_v7  ;;  %1342 = vmatprep.mubr.msk.f32.mxu1 %vm46_vm0, %v36_v8  ;;  %v35_v11 = vld [vmem:[%s1883_s0 + $0x28] sm:$0xff]  ;;  %v37_v12 = vld [vmem:[%s1883_s0 + $0x38] sm:$0xff]  ;;  %v190_v13 = vld [vmem:[%s1886_s3] sm:$0xff]  ;;  %vm199_vm2 = vcmask 130048   ;;  %v1586_v54 = vmov 0.5   ;;  %s1588_s12 = smov 32  }
   0x7   :  { %1467 = vmatprep.subr.bf16.mxu0 %v1583_v6  ;;  %1343 = vmatmul.mubr.msk.f32.vlgmr.msra.gmra.mrb[0].mxu1 %vm46_vm0, %v37_v12  ;;  %v191_v14 = vld [vmem:[%s1886_s3 + $0x8] sm:$0xff]  ;;  %v339_v16 = vld [vmem:[%s1887_s4 + $0x10] sm:$0xff]  ;;  %v340_v17 = vld [vmem:[%s1887_s4 + $0x18] sm:$0xff]  ;;  %v185_v48 = vand.u32 127, %v184_v47  ;;  %vm342_vm6 = vcmask 261120  }
   0x8   :  { %1337 = vmatmul.mubr.msk.f32.gmra.mrb[2].mxu0 %vm46_vm0, %v33_v9  ;;  %v1460_v15 = vpack.c.bf16 %v191_v14, %v190_v13  ;;  %v1693_v18 = vpack.c.bf16 %v340_v17, %v339_v16  ;;  %v1240_v20 = vld [vmem:[%s1885_s2] ss:$0 sm:$0xff]  ;;  %v1141_v51 = vld [vmem:[%s1889_s6 + $0x10] sm:$0xff] }
   0x9   :  { %1339 = vmatprep.mubr.msk.f32.mxu0 %vm46_vm0, %v34_v10  ;;  %vm186_vm3 = vcmp.ge.s32.totalorder %v185_v48, 64  ;;  %vm187_vm4 = vcmp.lt.s32.totalorder %v185_v48, 96  ;;  %v1727_v49 = vld [vmem:[%s1888_s5] ss:$0 sm:$0xff]  ;;  %s1587_s5 = smov 64  }
   0xa   :  { %1461 = vmatprep.subr.bf16.mxu1 %v1460_v15  ;;  %1469 = vmatpush3.bf16.msra.mxu0 %v1693_v18  ;;  %vm1729_vm5 = vmand %vm186_vm3, %vm187_vm4 }
   0xb   :  { %1463 = vmatpush3.bf16.msra.mxu1 %v1460_v15  ;;  %1476 = vmatprep.subr.bf16.mxu0 %v1583_v6  ;;  %v1736_v55 = vsel %vm1729_vm5, 1.0, %v1586_v54 }
   0xc   :  { %1340 = vmatmul.mubr.msk.f32.gmra.mrb[4].mxu0 %vm46_vm0, %v35_v11  ;;  %1470 = vmatprep.subr.bf16.mxu1 %v1583_v6 }
   0xd   :  { %1369 = vmatprep.mubr.msk.f32.mxu0 %vm1584_vm1, %v1585_v19 }
  0x10   :  { %1370 = vmatmul.mubr.f32.vlgmr.msra.gmra.mrb[6].mxu0 %v1585_v19 }
  0x11   :  { %1478 = vmatpush3.bf16.msra.mxu0 %v1656_v7  ;;  %1391 = vmatprep.mubr.msk.f32.mxu0 %vm1584_vm1, %v1585_v19 }
  0x12   :  { %1479 = vmatprep.subr.bf16.mxu0 %v1583_v6 }
  0x15   :  { %1481 = vmatpush3.bf16.msra.mxu0 %v1693_v18 }
  0x16   :  { %1488 = vmatprep.subr.bf16.mxu0 %v1583_v6 }
  0xd7   :  { %v1335_v21 = vpop.f32.mrb[0].mxu0 }
  0xd8   :  { %v143_v22 = vadd.f32 %v1335_v21, %v1240_v20  ;;  %v137_v23 = vpop.f32.mrb[1].mxu0 }
  0xd9   :  { %v138_v24 = vadd.f32 %v1240_v20, %v137_v23 }
  0xda   :  { %v177_v27 = vmax.f32 %v143_v22, 0.0  ;;  %v1344_v39 = vpop.f32.mrb[0].mxu1 }
  0xdb   :  { %v176_v25 = vmax.f32 %v138_v24, 0.0  ;;  %v1338_v26 = vpop.f32.mrb[2].mxu0  ;;  %v173_v40 = vadd.f32 %v1344_v39, %v1240_v20  ;;  %v167_v41 = vpop.f32.mrb[1].mxu1 }
  0xdc   :  { %v153_v28 = vadd.f32 %v1338_v26, %v1240_v20  ;;  %v147_v29 = vpop.f32.mrb[3].mxu0  ;;  %v168_v42 = vadd.f32 %v1240_v20, %v167_v41 }
  0xdd   :  { %1349 = vmatprep.mubr.msk.f32.mxu1 %vm199_vm2, %v176_v25  ;;  %v148_v30 = vadd.f32 %v1240_v20, %v147_v29  ;;  %v183_v43 = vmax.f32 %v173_v40, 0.0 }
  0xde   :  { %1350 = vmatmul.mubr.msk.f32.vlgmr.msra.gmra.mrb[2].mxu1 %vm199_vm2, %v177_v27  ;;  %v179_v31 = vmax.f32 %v153_v28, 0.0  ;;  %v182_v44 = vmax.f32 %v168_v42, 0.0 }
  0xdf   :  { %v178_v32 = vmax.f32 %v148_v30, 0.0  ;;  %v1341_v33 = vpop.f32.mrb[4].mxu0  ;;  %1472 = vmatpush3.bf16.msra.mxu1 %v1656_v7 }
  0xe0   :  { %v163_v34 = vadd.f32 %v1341_v33, %v1240_v20  ;;  %v157_v35 = vpop.f32.mrb[5].mxu0  ;;  %1473 = vmatprep.subr.bf16.mxu1 %v1583_v6 }
  0xe1   :  { %v158_v36 = vadd.f32 %v1240_v20, %v157_v35  ;;  %1352 = vmatprep.mubr.msk.f32.mxu1 %vm199_vm2, %v178_v32 }
  0xe2   :  { %v181_v37 = vmax.f32 %v163_v34, 0.0  ;;  %1353 = vmatmul.mubr.msk.f32.gmra.mrb[4].mxu1 %vm199_vm2, %v179_v31 }
  0xe3   :  { %v180_v38 = vmax.f32 %v158_v36, 0.0  ;;  %1475 = vmatpush3.bf16.msra.mxu1 %v1693_v18  ;;  %v412_v45 = vpop.f32.mrb[6].mxu0 }
  0xe4   :  { %1482 = vmatprep.subr.bf16.mxu1 %v1583_v6  ;;  %v1371_v46 = vpop.f32.mrb[7].mxu0 }
  0xe5   :  { %1355 = vmatprep.mubr.msk.f32.mxu1 %vm199_vm2, %v180_v38 }
  0xe6   :  { %1356 = vmatmul.mubr.msk.f32.gmra.mrb[6].mxu1 %vm199_vm2, %v181_v37 }
  0xe7   :  { %1358 = vmatprep.mubr.msk.f32.mxu1 %vm199_vm2, %v182_v44 }
  0xea   :  { %1359 = vmatmul.mubr.msk.f32.gmra.mrb[8].mxu1 %vm199_vm2, %v183_v43 }
  0xeb   :  { %1380 = vmatprep.mubr.msk.f32.mxu1 %vm1584_vm1, %v1585_v19 }
 0x1b1   :  { %v1351_v50 = vpop.f32.mrb[2].mxu1 }
 0x1b2   :  { %v290_v52 = vpop.f32.mrb[3].mxu1  ;;  %v296_v15 = vadd.f32 %v1351_v50, %v1727_v49 }
 0x1b3   :  { %v291_v53 = vadd.f32 %v1727_v49, %v290_v52 }
 0x1b5   :  { %v416_v56 = vadd.f32 %v412_v45, %v291_v53  ;;  %v1739_v58 = vpop.f32.mrb[4].mxu1 }
 0x1b6   :  { %v300_v59 = vpop.f32.mrb[5].mxu1 }
 0x1b7   :  { %v417_v57 = vmul.f32 %v416_v56, %v1736_v55  ;;  %v301_v35 = vadd.f32 %v1727_v49, %v300_v59  ;;  %v306_v56 = vadd.f32 %v1739_v58, %v1727_v49 }
 0x1b9   :  { %1527 = vtanh.f32 %v417_v57  ;;  %v1741_v60 = vpop.f32.mrb[6].mxu1 }
 0x1ba   :  { %v1743_v61 = vpop.f32.mrb[7].mxu1 }
 0x1bd   :  { %v1748_v2 = vpop.f32.mrb[8].mxu1 }
 0x1be   :  { %v1750_v3 = vpop.f32.mrb[9].mxu1 }
 0x1c3   :  { %v1528_v62 = vpop.eup %1527 }
 0x1c4   :  { %v419_v63 = vadd.f32 1.0, %v1528_v62 }
 0x1c6   :  { %v420_v0 = vmul.f32 0.5, %v419_v63 }
 0x1c8   :  { %v421_v1 = vsel %vm1729_vm5, %v1528_v62, %v420_v0 }
 0x1c9   :  { %424 = vrot.lane.b32.xlu0 %v421_v1, %s1587_s5  ;;  %v422_v8 = vmul.f32 0.0, %v421_v1 }
 0x23b   :  { %v425_v4 = vpop.permute.xlu0 %424 }
 0x23c   :  { %v427_v5 = vmul.f32 %v425_v4, %v421_v1 }
 0x23e   :  { %429 = vrot.lane.b32.xlu0 %v427_v5, %s1588_s12 }
 0x2b0   :  { %v430_v9 = vpop.permute.xlu0 %429 }
 0x2b1   :  { %v432_v10 = vadd.f32 %v430_v9, %v422_v8 }
 0x2b3   :  { %1529 = vtanh.f32 %v432_v10 }
 0x2bd   :  { %v1530_v11 = vpop.eup %1529 }
 0x2be   :  { %435 = vrot.lane.b32.xlu1 %v1530_v11, %s1587_s5 }
 0x330   :  { %v436_v12 = vpop.permute.xlu1 %435 }
 0x331   :  { %v438_v13 = vmul.f32 %v436_v12, %v421_v1 }
 0x333   :  { %442 = vrot.lane.b32.xlu1 %v438_v13, %s1588_s12 }
 0x3a5   :  { %v443_v14 = vpop.permute.xlu1 %442 }
 0x3a6   :  { %1381 = vmatmul.mubr.msk.f32.vlgmr.msra.gmra.mrb[10].mxu1 %vm342_vm6, %v443_v14 }
 0x3a7   :  { %1484 = vmatpush3.bf16.msra.mxu1 %v1656_v7  ;;  %1402 = vmatprep.mubr.msk.f32.mxu1 %vm1584_vm1, %v1585_v19 }
 0x3a8   :  { %1485 = vmatprep.subr.bf16.mxu1 %v1583_v6 }
 0x3ab   :  { %1487 = vmatpush3.bf16.msra.mxu1 %v1693_v18 }
 0x3ac   :  { %1494 = vmatprep.subr.bf16.mxu1 %v1583_v6 }
 0x479   :  { %v512_v16 = vpop.f32.mrb[10].mxu1 }
 0x47a   :  { %v516_v17 = vadd.f32 %v512_v16, %v296_v15  ;;  %v1382_v20 = vpop.f32.mrb[11].mxu1  ;;  %v311_v16 = vadd.f32 %v1727_v49, %v1743_v61 }
 0x47c   :  { %v517_v21 = vmul.f32 %v516_v17, %v1736_v55 }
 0x47e   :  { %1531 = vtanh.f32 %v517_v21 }
 0x488   :  { %v1532_v22 = vpop.eup %1531 }
 0x489   :  { %v519_v23 = vadd.f32 1.0, %v1532_v22 }
 0x48b   :  { %v520_v24 = vmul.f32 0.5, %v519_v23 }
 0x48d   :  { %v521_v25 = vsel %vm1729_vm5, %v1532_v22, %v520_v24 }
 0x48e   :  { %524 = vrot.lane.b32.xlu0 %v521_v25, %s1587_s5  ;;  %v522_v28 = vmul.f32 %v521_v25, %v432_v10 }
 0x500   :  { %v525_v26 = vpop.permute.xlu0 %524 }
 0x501   :  { %v527_v27 = vmul.f32 %v525_v26, %v521_v25 }
 0x503   :  { %529 = vrot.lane.b32.xlu1 %v527_v27, %s1588_s12 }
 0x575   :  { %v530_v29 = vpop.permute.xlu1 %529 }
 0x576   :  { %v532_v30 = vadd.f32 %v530_v29, %v522_v28 }
 0x578   :  { %1533 = vtanh.f32 %v532_v30 }
 0x582   :  { %v1534_v31 = vpop.eup %1533 }
 0x583   :  { %535 = vrot.lane.b32.xlu0 %v1534_v31, %s1587_s5 }
 0x5f5   :  { %v536_v32 = vpop.permute.xlu0 %535 }
 0x5f6   :  { %v538_v33 = vmul.f32 %v536_v32, %v521_v25 }
 0x5f8   :  { %542 = vrot.lane.b32.xlu1 %v538_v33, %s1588_s12 }
 0x66a   :  { %v543_v34 = vpop.permute.xlu1 %542 }
 0x66b   :  { %1392 = vmatmul.mubr.msk.f32.vlgmr.msra.gmra.mrb[8].mxu0 %vm342_vm6, %v543_v34 }
 0x66c   :  { %1490 = vmatpush3.bf16.msra.mxu0 %v1656_v7  ;;  %1413 = vmatprep.mubr.msk.f32.mxu0 %vm1584_vm1, %v1585_v19 }
 0x66d   :  { %1491 = vmatprep.subr.bf16.mxu0 %v1583_v6 }
 0x670   :  { %1493 = vmatpush3.bf16.msra.mxu0 %v1693_v18 }
 0x671   :  { %1500 = vmatprep.subr.bf16.mxu0 %v1583_v6 }
 0x73e   :  { %v612_v36 = vpop.f32.mrb[8].mxu0 }
 0x73f   :  { %v616_v37 = vadd.f32 %v612_v36, %v301_v35  ;;  %v1393_v38 = vpop.f32.mrb[9].mxu0  ;;  %v316_v35 = vadd.f32 %v1741_v60, %v1727_v49 }
 0x741   :  { %v617_v39 = vmul.f32 %v616_v37, %v1736_v55 }
 0x743   :  { %1535 = vtanh.f32 %v617_v39 }
 0x74d   :  { %v1536_v40 = vpop.eup %1535 }
 0x74e   :  { %v619_v41 = vadd.f32 1.0, %v1536_v40 }
 0x750   :  { %v620_v42 = vmul.f32 0.5, %v619_v41 }
 0x752   :  { %v621_v43 = vsel %vm1729_vm5, %v1536_v40, %v620_v42 }
 0x753   :  { %624 = vrot.lane.b32.xlu0 %v621_v43, %s1587_s5  ;;  %v622_v46 = vmul.f32 %v621_v43, %v532_v30 }
 0x7c5   :  { %v625_v44 = vpop.permute.xlu0 %624 }
 0x7c6   :  { %v627_v45 = vmul.f32 %v625_v44, %v621_v43 }
 0x7c8   :  { %629 = vrot.lane.b32.xlu1 %v627_v45, %s1588_s12 }
 0x83a   :  { %v630_v47 = vpop.permute.xlu1 %629 }
 0x83b   :  { %v632_v48 = vadd.f32 %v630_v47, %v622_v46 }
 0x83d   :  { %1537 = vtanh.f32 %v632_v48 }
 0x847   :  { %v1538_v50 = vpop.eup %1537 }
 0x848   :  { %635 = vrot.lane.b32.xlu0 %v1538_v50, %s1587_s5 }
 0x8ba   :  { %v636_v52 = vpop.permute.xlu0 %635 }
 0x8bb   :  { %v638_v53 = vmul.f32 %v636_v52, %v621_v43  ;;  %v321_v52 = vadd.f32 %v1727_v49, %v1750_v3 }
 0x8bd   :  { %642 = vrot.lane.b32.xlu1 %v638_v53, %s1588_s12 }
 0x92f   :  { %v643_v54 = vpop.permute.xlu1 %642 }
 0x930   :  { %1403 = vmatmul.mubr.msk.f32.vlgmr.msra.gmra.mrb[12].mxu1 %vm342_vm6, %v643_v54 }
 0x931   :  { %1496 = vmatpush3.bf16.msra.mxu1 %v1656_v7  ;;  %1424 = vmatprep.mubr.msk.f32.mxu1 %vm1584_vm1, %v1585_v19 }
 0x932   :  { %1497 = vmatprep.subr.bf16.mxu1 %v1583_v6 }
 0x935   :  { %1499 = vmatpush3.bf16.msra.mxu1 %v1693_v18 }
 0x936   :  { %1506 = vmatprep.subr.bf16.mxu1 %v1583_v6 }
 0xa03   :  { %v712_v57 = vpop.f32.mrb[12].mxu1 }
 0xa04   :  { %v716_v59 = vadd.f32 %v712_v57, %v306_v56  ;;  %v1404_v62 = vpop.f32.mrb[13].mxu1 }
 0xa06   :  { %v717_v63 = vmul.f32 %v716_v59, %v1736_v55 }
 0xa08   :  { %1539 = vtanh.f32 %v717_v63 }
 0xa12   :  { %v1540_v0 = vpop.eup %1539 }
 0xa13   :  { %v719_v1 = vadd.f32 1.0, %v1540_v0 }
 0xa15   :  { %v720_v4 = vmul.f32 0.5, %v719_v1 }
 0xa17   :  { %v721_v5 = vsel %vm1729_vm5, %v1540_v0, %v720_v4 }
 0xa18   :  { %724 = vrot.lane.b32.xlu0 %v721_v5, %s1587_s5  ;;  %v722_v10 = vmul.f32 %v721_v5, %v632_v48 }
 0xa8a   :  { %v725_v8 = vpop.permute.xlu0 %724 }
 0xa8b   :  { %v727_v9 = vmul.f32 %v725_v8, %v721_v5 }
 0xa8d   :  { %729 = vrot.lane.b32.xlu1 %v727_v9, %s1588_s12 }
 0xaff   :  { %v730_v58 = vpop.permute.xlu1 %729 }
 0xb00   :  { %v732_v11 = vadd.f32 %v730_v58, %v722_v10 }
 0xb02   :  { %1541 = vtanh.f32 %v732_v11 }
 0xb0c   :  { %v1542_v12 = vpop.eup %1541 }
 0xb0d   :  { %735 = vrot.lane.b32.xlu0 %v1542_v12, %s1587_s5 }
 0xb7f   :  { %v736_v13 = vpop.permute.xlu0 %735 }
 0xb80   :  { %v738_v14 = vmul.f32 %v736_v13, %v721_v5 }
 0xb82   :  { %742 = vrot.lane.b32.xlu1 %v738_v14, %s1588_s12 }
 0xbf4   :  { %v743_v15 = vpop.permute.xlu1 %742 }
 0xbf5   :  { %1414 = vmatmul.mubr.msk.f32.vlgmr.msra.gmra.mrb[10].mxu0 %vm342_vm6, %v743_v15 }
 0xbf6   :  { %1502 = vmatpush3.bf16.msra.mxu0 %v1656_v7  ;;  %1435 = vmatprep.mubr.msk.f32.mxu0 %vm1584_vm1, %v1585_v19 }
 0xbf7   :  { %1503 = vmatprep.subr.bf16.mxu0 %v1583_v6 }
 0xbfa   :  { %1505 = vmatpush3.bf16.msra.mxu0 %v1693_v18 }
 0xbfb   :  { %1512 = vmatprep.subr.bf16.mxu0 %v1583_v6 }
 0xcc8   :  { %v812_v17 = vpop.f32.mrb[10].mxu0 }
 0xcc9   :  { %v816_v20 = vadd.f32 %v812_v17, %v311_v16  ;;  %v1415_v21 = vpop.f32.mrb[11].mxu0 }
 0xccb   :  { %v817_v22 = vmul.f32 %v816_v20, %v1736_v55 }
 0xccd   :  { %1543 = vtanh.f32 %v817_v22 }
 0xcd7   :  { %v1544_v23 = vpop.eup %1543 }
 0xcd8   :  { %v819_v24 = vadd.f32 1.0, %v1544_v23 }
 0xcda   :  { %v820_v25 = vmul.f32 0.5, %v819_v24 }
 0xcdc   :  { %v821_v26 = vsel %vm1729_vm5, %v1544_v23, %v820_v25  ;;  %v1140_v25 = vld [vmem:[%s1889_s6 + $0x8] sm:$0xff] }
 0xcdd   :  { %824 = vrot.lane.b32.xlu0 %v821_v26, %s1587_s5  ;;  %v822_v29 = vmul.f32 %v821_v26, %v732_v11  ;;  %v326_v11 = vadd.f32 %v1748_v2, %v1727_v49 }
 0xd4f   :  { %v825_v27 = vpop.permute.xlu0 %824 }
 0xd50   :  { %v827_v28 = vmul.f32 %v825_v27, %v821_v26  ;;  %v1142_v27 = vld [vmem:[%s1889_s6 + $0x18] sm:$0xff] }
 0xd52   :  { %829 = vrot.lane.b32.xlu1 %v827_v28, %s1588_s12  ;;  %v1516_v28 = vpack.c.bf16 %v1142_v27, %v1141_v51 }
 0xdc4   :  { %v830_v61 = vpop.permute.xlu1 %829 }
 0xdc5   :  { %v832_v30 = vadd.f32 %v830_v61, %v822_v29 }
 0xdc7   :  { %1545 = vtanh.f32 %v832_v30 }
 0xdd1   :  { %v1546_v31 = vpop.eup %1545 }
 0xdd2   :  { %835 = vrot.lane.b32.xlu0 %v1546_v31, %s1587_s5 }
 0xe44   :  { %v836_v32 = vpop.permute.xlu0 %835 }
 0xe45   :  { %v838_v33 = vmul.f32 %v836_v32, %v821_v26  ;;  %v1265_v32 = vld [vmem:[%s1890_s7] ss:$0 sm:$0xff] }
 0xe47   :  { %842 = vrot.lane.b32.xlu1 %v838_v33, %s1588_s12 }
 0xeb9   :  { %v843_v34 = vpop.permute.xlu1 %842 }
 0xeba   :  { %1425 = vmatmul.mubr.msk.f32.vlgmr.msra.gmra.mrb[14].mxu1 %vm342_vm6, %v843_v34 }
 0xebb   :  { %1508 = vmatpush3.bf16.msra.mxu1 %v1656_v7  ;;  %1446 = vmatprep.mubr.msk.f32.mxu1 %vm1584_vm1, %v1585_v19 }
 0xebc   :  { %1509 = vmatprep.subr.bf16.mxu1 %v1583_v6 }
 0xebf   :  { %1511 = vmatpush3.bf16.msra.mxu1 %v1693_v18 }
 0xf8d   :  { %v912_v36 = vpop.f32.mrb[14].mxu1 }
 0xf8e   :  { %v916_v37 = vadd.f32 %v912_v36, %v316_v35  ;;  %v1426_v38 = vpop.f32.mrb[15].mxu1 }
 0xf90   :  { %v917_v39 = vmul.f32 %v916_v37, %v1736_v55 }
 0xf92   :  { %1547 = vtanh.f32 %v917_v39 }
 0xf9c   :  { %v1548_v40 = vpop.eup %1547 }
 0xf9d   :  { %v919_v41 = vadd.f32 1.0, %v1548_v40 }
 0xf9f   :  { %v920_v42 = vmul.f32 0.5, %v919_v41 }
 0xfa1   :  { %v921_v7 = vsel %vm1729_vm5, %v1548_v40, %v920_v42 }
 0xfa2   :  { %924 = vrot.lane.b32.xlu0 %v921_v7, %s1587_s5  ;;  %v922_v18 = vmul.f32 %v921_v7, %v832_v30 }
0x1014   :  { %v925_v43 = vpop.permute.xlu0 %924 }
0x1015   :  { %v927_v44 = vmul.f32 %v925_v43, %v921_v7 }
0x1017   :  { %929 = vrot.lane.b32.xlu1 %v927_v44, %s1588_s12 }
0x1089   :  { %v930_v60 = vpop.permute.xlu1 %929 }
0x108a   :  { %v932_v45 = vadd.f32 %v930_v60, %v922_v18 }
0x108c   :  { %1549 = vtanh.f32 %v932_v45 }
0x1096   :  { %v1550_v46 = vpop.eup %1549 }
0x1097   :  { %935 = vrot.lane.b32.xlu0 %v1550_v46, %s1587_s5 }
0x1109   :  { %v936_v47 = vpop.permute.xlu0 %935 }
0x110a   :  { %v938_v48 = vmul.f32 %v936_v47, %v921_v7 }
0x110c   :  { %942 = vrot.lane.b32.xlu1 %v938_v48, %s1588_s12 }
0x117e   :  { %v943_v50 = vpop.permute.xlu1 %942 }
0x117f   :  { %1436 = vmatmul.mubr.msk.f32.vlgmr.msra.gmra.mrb[12].mxu0 %vm342_vm6, %v943_v50 }
0x1180   :  { %1457 = vmatprep.mubr.msk.f32.mxu0 %vm1584_vm1, %v1585_v19 }
0x1252   :  { %v1012_v53 = vpop.f32.mrb[12].mxu0 }
0x1253   :  { %v1016_v54 = vadd.f32 %v1012_v53, %v321_v52  ;;  %v1437_v56 = vpop.f32.mrb[13].mxu0 }
0x1255   :  { %v1017_v57 = vmul.f32 %v1016_v54, %v1736_v55 }
0x1257   :  { %1551 = vtanh.f32 %v1017_v57 }
0x1261   :  { %v1552_v59 = vpop.eup %1551 }
0x1262   :  { %v1019_v62 = vadd.f32 1.0, %v1552_v59 }
0x1264   :  { %v1020_v63 = vmul.f32 0.5, %v1019_v62 }
0x1266   :  { %v1021_v0 = vsel %vm1729_vm5, %v1552_v59, %v1020_v63 }
0x1267   :  { %1024 = vrot.lane.b32.xlu0 %v1021_v0, %s1587_s5  ;;  %v1022_v19 = vmul.f32 %v1021_v0, %v932_v45 }
0x12d9   :  { %v1025_v1 = vpop.permute.xlu0 %1024 }
0x12da   :  { %v1027_v4 = vmul.f32 %v1025_v1, %v1021_v0 }
0x12dc   :  { %1029 = vrot.lane.b32.xlu1 %v1027_v4, %s1588_s12 }
0x134e   :  { %v1030_v3 = vpop.permute.xlu1 %1029 }
0x134f   :  { %v1032_v5 = vadd.f32 %v1030_v3, %v1022_v19 }
0x1351   :  { %1553 = vtanh.f32 %v1032_v5 }
0x135b   :  { %v1554_v8 = vpop.eup %1553 }
0x135c   :  { %1035 = vrot.lane.b32.xlu0 %v1554_v8, %s1587_s5 }
0x13ce   :  { %v1036_v9 = vpop.permute.xlu0 %1035 }
0x13cf   :  { %v1038_v10 = vmul.f32 %v1036_v9, %v1021_v0 }
0x13d1   :  { %1042 = vrot.lane.b32.xlu1 %v1038_v10, %s1588_s12 }
0x1443   :  { %v1043_v58 = vpop.permute.xlu1 %1042 }
0x1444   :  { %1447 = vmatmul.mubr.msk.f32.vlgmr.msra.gmra.mrb[16].mxu1 %vm342_vm6, %v1043_v58 }
0x1517   :  { %v1112_v12 = vpop.f32.mrb[16].mxu1 }
0x1518   :  { %v1116_v13 = vadd.f32 %v1112_v12, %v326_v11  ;;  %v1448_v14 = vpop.f32.mrb[17].mxu1 }
0x151a   :  { %v1117_v15 = vmul.f32 %v1116_v13, %v1736_v55  ;;  %v1139_v55 = vld [vmem:[%s1889_s6] sm:$0xff]  ;;  %s1589_s6 = smov [#allocation3]  }
0x151b   :  { %v1513_v26 = vpack.c.bf16 %v1140_v25, %v1139_v55  ;;  %s1232_s22 = sshll.u32 %s1589_s6, 4  ;;  %s1233_s22 = int_to_ptr.vmem [resolvable:$true] %s1232_s22 }
0x151c   :  { %1555 = vtanh.f32 %v1117_v15  ;;  %s1559_s23 = scalar_lea.vmem %s1233_s22, 128  ;;  %p1564_p1 = scmp.lt.s32.totalorder %s1233_s22, %s1233_s22 }
0x151d   :  { %1514 = vmatpush3.bf16.msra.mxu0 %v1513_v26  ;;  %p1560_p0 = scmp.ne.s32.totalorder %s1233_s22, %s1559_s23  ;;  %p1565_p2 = scmp.lt.s32.totalorder %s1559_s23, %s1559_s23 }
0x151e   :  { %1515 = vmatprep.subr.bf16.mxu0 %v1583_v6 }
0x151f   :  { %p1566_p3 = por %p1565_p2, %p1564_p1 }
0x1521   :  { %1517 = vmatpush3.bf16.msra.mxu0 %v1516_v28  ;;  %p1567_p4 = pnand %p1566_p3, %p1560_p0 }
0x1526   :  { %v1556_v16 = vpop.eup %1555 }
0x1527   :  { %v1119_v17 = vadd.f32 1.0, %v1556_v16 }
0x1529   :  { %v1120_v20 = vmul.f32 0.5, %v1119_v17 }
0x152b   :  { %v1121_v21 = vsel %vm1729_vm5, %v1556_v16, %v1120_v20 }
0x152c   :  { %1124 = vrot.lane.b32.xlu0 %v1121_v21, %s1587_s5  ;;  %v1122_v24 = vmul.f32 %v1121_v21, %v1032_v5 }
0x159e   :  { %v1125_v22 = vpop.permute.xlu0 %1124 }
0x159f   :  { %v1127_v23 = vmul.f32 %v1125_v22, %v1121_v21 }
0x15a1   :  { %1129 = vrot.lane.b32.xlu1 %v1127_v23, %s1588_s12 }
0x1613   :  { %v1130_v49 = vpop.permute.xlu1 %1129 }
0x1614   :  { %v1132_v2 = vadd.f32 %v1130_v49, %v1122_v24 }
0x1616   :  { %1557 = vtanh.f32 %v1132_v2 }
0x1620   :  { %v1558_v29 = vpop.eup %1557 }
0x1621   :  { %1135 = vrot.lane.b32.xlu0 %v1558_v29, %s1587_s5 }
0x1693   :  { %v1136_v61 = vpop.permute.xlu0 %1135 }
0x1694   :  { %v1138_v30 = vmul.f32 %v1136_v61, %v1121_v21 }
0x1696   :  { %1151 = vrot.lane.b32.xlu1 %v1138_v30, %s1588_s12 }
0x1708   :  { %v1152_v31 = vpop.permute.xlu1 %1151 }
0x1709   :  { %1458 = vmatmul.mubr.msk.f32.vlgmr.msra.gmra.mrb[14].mxu0 %vm342_vm6, %v1152_v31 }
0x17dc   :  { %v1221_v33 = vpop.f32.mrb[14].mxu0 }
0x17dd   :  { %v1222_v34 = vadd.f32 %v1265_v32, %v1221_v33  ;;  %v1459_v6 = vpop.f32.mrb[15].mxu0 }
0x17df   :  { %1225 = vst [vmem:[#allocation3] sm:$0xff] %v1222_v34 }
0x17e0   :  { %1570 = shalt.err (!%p1567_p4)
}
0x17e1   :  { %s1571_s26 = scalar_lea.hbm %s1891_s8, 128 }
0x17e2   :  { %p1572_p5 = scmp.ne.s32.totalorder %s1891_s8, %s1571_s26  ;;  %p1575_p6 = scmp.lt.u32.totalorder %s1571_s26, %s1891_s8 }
0x17e4   :  { %p1577_p7 = pnand %p1575_p6, %p1572_p5 }
0x17e6   :  { %1580 = shalt.err (!%p1577_p7)
}
0x17e7   :  { %1235 = dma.vmem_to_hbm [thread:$0]  %s1233_s22, 128, %s1891_s8, [#allocation4]  }
0x17e8   :  { %1581 = dma.done.wait [#allocation4], 128  }
0x17e9   :  { %1582 = vsyncadd [#allocation4], 4294967168 }
0x17ea   :  { %1239 = vsyncpa [#allocation4], 1 }

</bundles_post_ra>
